<compile_context>
chip_gen: v7x
topology: tpu7x:2x2x1
jax: 0.10.0
libtpu: 0.0.40
codegen_flags: <defaults>
</compile_context>

<pallas_src>
import functools

import jax
import jax.numpy as jnp
import numpy as np
from jax.experimental import pallas as pl
from jax.experimental.pallas import tpu as pltpu


def _round_up(x, m):
    return (x + m - 1) // m * m


# ---------------------------------------------------------------------------
# Kernel: per-pixel log-softmax over classes (sublanes), target-class gather,
# valid mask.  Native layout, lane-dense packed output.
# ---------------------------------------------------------------------------
def _ohem_pixel_kernel(pred_ref, tgt_ref, out_ref, *, ignore_label):
    # pred_ref: (1, C, TP) logits   tgt_ref: (1, 1, TP) int32
    # out_ref:  (1, 3, TP) packed rows [mask_prob, nll, valid]
    logits = pred_ref[...].astype(jnp.float32)               # (1, C, TP)
    tgt = tgt_ref[...]                                        # (1, 1, TP)
    valid = tgt != ignore_label                               # (1, 1, TP)
    tgt_c = jnp.where(valid, tgt, 0)                          # target * valid_mask

    # Numerically stable log-softmax over the class (sublane) axis.
    m = jnp.max(logits, axis=1, keepdims=True)                # (1, 1, TP)
    z = logits - m
    log_denom = jnp.log(jnp.sum(jnp.exp(z), axis=1, keepdims=True))

    # Single masked gather of the target-class (shifted) logit.
    onehot = jax.lax.broadcasted_iota(jnp.int32, logits.shape, 1) == tgt_c
    logit_t = jnp.sum(jnp.where(onehot, z, 0.0), axis=1, keepdims=True)

    nll_t = log_denom - logit_t                               # -log_softmax[target]
    p_t = jnp.exp(-nll_t)                                     # softmax prob of target (EUP)

    out_ref[:, 0:1, :] = jnp.where(valid, p_t, 1.0)           # masked_fill(~valid, 1)
    out_ref[:, 1:2, :] = nll_t
    out_ref[:, 2:3, :] = valid.astype(jnp.float32)


# ---------------------------------------------------------------------------
# Tile selection: big lane tiles, VMEM-budgeted per generation.
# ---------------------------------------------------------------------------
def _choose_tiling(p, c, itemsize=4, vmem_budget=6 << 20, max_tile=8192):
    # Double-buffered (1, C, tile_p) pred block dominates VMEM: 2*C*tile_p*item.
    # 6 MiB budget keeps the whole pipeline under v5e's 16 MiB scoped default
    # (and trivially under v6e/v7x's 32 MiB scoped limit).
    cap = (vmem_budget // (2 * c * itemsize)) // 128 * 128
    cap = max(128, min(max_tile, cap))
    p128 = _round_up(p, 128)
    g_total = p128 // 128
    # Largest multiple-of-128 divisor of the lightly padded pixel count that
    # fits the cap (keeps padding to <= 127 pixels when possible).
    g = 1
    for cand in range(min(cap // 128, g_total), 0, -1):
        if g_total % cand == 0:
            g = cand
            break
    tile_p, p_pad = g * 128, p128
    # If the divisor-based tile would be grid-step-overhead dominated, pad up
    # to the cap instead.
    if tile_p * 8 < min(cap, p128):
        tile_p = cap
        p_pad = _round_up(p, cap)
    return tile_p, p_pad


# ---------------------------------------------------------------------------
# Wrapper: ProbOhemCrossEntropy2d.forward
# ---------------------------------------------------------------------------
@functools.partial(jax.jit, static_argnames=("ignore_label", "thresh", "min_kept"))
def prob_ohem_cross_entropy_2d(pred, target, *, ignore_label, thresh=0.6,
                               min_kept=256):
    b, c, h, w = pred.shape
    p = h * w
    n = b * p

    tile_p, p_pad = _choose_tiling(p, c, itemsize=pred.dtype.itemsize)

    # Native layout: free reshape only, no HBM transpose pass.
    pred3 = pred.reshape(b, c, p)
    tgt3 = target.reshape(b, 1, p).astype(jnp.int32)
    if p_pad != p:
        pred3 = jnp.pad(pred3, ((0, 0), (0, 0), (0, p_pad - p)))
        tgt3 = jnp.pad(tgt3, ((0, 0), (0, 0), (0, p_pad - p)),
                       constant_values=ignore_label)

    grid = (b, p_pad // tile_p)

    packed = pl.pallas_call(
        functools.partial(_ohem_pixel_kernel, ignore_label=ignore_label),
        out_shape=jax.ShapeDtypeStruct((b, 3, p_pad), jnp.float32),
        grid_spec=pltpu.PrefetchScalarGridSpec(
            num_scalar_prefetch=0,
            grid=grid,
            in_specs=[pl.BlockSpec((1, c, tile_p), lambda bi, pi: (bi, 0, pi)),
                      pl.BlockSpec((1, 1, tile_p), lambda bi, pi: (bi, 0, pi))],
            out_specs=pl.BlockSpec((1, 3, tile_p), lambda bi, pi: (bi, 0, pi))),
        compiler_params=pltpu.CompilerParams(
            dimension_semantics=("parallel", "parallel")),
    )(pred3, tgt3)

    prob = packed[:, 0, :]       # (b, p_pad); padded pixels carry prob = 1.0
    nll = packed[:, 1, :]
    valid = packed[:, 2, :]      # padded pixels carry valid = 0.0

    num_valid = jnp.sum(valid)
    thresh_f = jnp.float32(thresh)

    if min_kept > 0:
        # k-th smallest of mask_prob (torch argsort) via top_k on negated probs
        # with k = min(n, min_kept).  Padded probs are exactly 1.0 (>= any real
        # value) and k <= n, so the order statistic is unchanged.
        # TODO(synk): no Pallas sort/top-k primitive; this stays in plain JAX.
        kcount = min(n, min_kept)
        neg_topk, _ = jax.lax.top_k(-prob.reshape(-1), kcount)
        kth = -neg_topk[kcount - 1]
        thr_ohem = jnp.maximum(kth, thresh_f)
        # OHEM applies only when num_valid >= min_kept and num_valid > 0
        # (matching torch's `if min_kept > num_valid: ... elif num_valid > 0:`);
        # otherwise keep every valid pixel (threshold 2.0 > any probability).
        do_ohem = (num_valid >= jnp.float32(min_kept)) & (num_valid > 0)
        thr = jnp.where(do_ohem, thr_ohem, jnp.float32(2.0))
    else:
        thr = jnp.float32(2.0)   # min_kept == 0: torch never filters

    # Final masked mean CE with ignore_index semantics: trivially mem-bound,
    # fully fused plain-JAX reduction (per perf review, the old Pallas reduce
    # kernel was grid-overhead bound).  NaN if no pixel kept (matches torch).
    keep = (valid > 0.5) & (prob <= thr)
    kf = keep.astype(jnp.float32)
    return jnp.sum(nll * kf) / jnp.sum(kf)


# ---------------------------------------------------------------------------
# Pure-JAX reference (for sanity check).
# ---------------------------------------------------------------------------
def _reference(pred, target, *, ignore_label, thresh, min_kept):
    b, c, h, w = pred.shape
    tgt = target.reshape(-1)
    valid = tgt != ignore_label
    tgt_c = jnp.where(valid, tgt, 0)
    num_valid = jnp.sum(valid)
    logits = jnp.transpose(pred, (0, 2, 3, 1)).reshape(-1, c).astype(jnp.float32)
    logp = jax.nn.log_softmax(logits, axis=1)
    rows = jnp.arange(tgt.shape[0])
    p_t = jnp.exp(logp[rows, tgt_c])
    mask_prob = jnp.where(valid, p_t, 1.0)
    thr = jnp.float32(thresh)
    if min_kept > 0:
        k = min(int(tgt.shape[0]), min_kept) - 1
        kth = jnp.sort(mask_prob)[k]
        thr = jnp.where(kth > thr, kth, thr)
        do_ohem = (num_valid >= min_kept) & (num_valid > 0)
        kept = jnp.where(do_ohem, mask_prob <= thr, True)
    else:
        kept = jnp.ones_like(valid)
    final_valid = valid & kept
    nll = -logp[rows, tgt_c]
    fv = final_valid.astype(jnp.float32)
    return jnp.sum(nll * fv) / jnp.sum(fv)


if __name__ == "__main__":
    key = jax.random.PRNGKey(0)
    k1, k2, k3 = jax.random.split(key, 3)

    B, C, H, W = 2, 4, 16, 16
    IGNORE = 255
    THRESH = 0.6
    MIN_KEPT = 64

    pred = jax.random.normal(k1, (B, C, H, W), dtype=jnp.float32)
    target = jax.random.randint(k2, (B, H, W), 0, C, dtype=jnp.int32)
    ignore_mask = jax.random.uniform(k3, (B, H, W)) < 0.1
    target = jnp.where(ignore_mask, IGNORE, target)

    loss = prob_ohem_cross_entropy_2d(
        pred, target, ignore_label=IGNORE, thresh=THRESH, min_kept=MIN_KEPT)
    loss = jax.block_until_ready(loss)

    ref = jax.block_until_ready(
        _reference(pred, target, ignore_label=IGNORE, thresh=THRESH,
                   min_kept=MIN_KEPT))

    np.testing.assert_allclose(np.asarray(loss), np.asarray(ref),
                               rtol=2e-2, atol=2e-2)
    print("KERNEL_OK")
</pallas_src>

<mosaic_0001>
module attributes {stable_mosaic.version = 11 : i64} {
  func.func @_ohem_pixel_kernel(%arg0: i32, %arg1: i32, %arg2: memref<1x4x256xf32, #tpu.memory_space<vmem>>, %arg3: memref<1x1x256xi32, #tpu.memory_space<vmem>>, %arg4: memref<1x3x256xf32, #tpu.memory_space<vmem>>) attributes {dimension_semantics = [#tpu.dimension_semantics<parallel>, #tpu.dimension_semantics<parallel>], iteration_bounds = array<i64: 2, 1>, scalar_prefetch = 0 : i64, scratch_operands = 0 : i64, tpu.core_type = #tpu.core_type<tc>, window_params = [{transform_indices = @transform_0, window_bounds = array<i64: 1, 4, 256>}, {transform_indices = @transform_1, window_bounds = array<i64: 1, 1, 256>}, {transform_indices = @transform_2, window_bounds = array<i64: 1, 3, 256>}]} {
    %c0 = arith.constant 0 : index
    %c0_0 = arith.constant 0 : index
    %c0_1 = arith.constant 0 : index
    %0 = vector.load %arg2[%c0, %c0_0, %c0_1] : memref<1x4x256xf32, #tpu.memory_space<vmem>>, vector<1x4x256xf32>
    %c0_2 = arith.constant 0 : index
    %c0_3 = arith.constant 0 : index
    %c0_4 = arith.constant 0 : index
    %1 = vector.load %arg3[%c0_2, %c0_3, %c0_4] : memref<1x1x256xi32, #tpu.memory_space<vmem>>, vector<1x1x256xi32>
    %c255_i32 = arith.constant 255 : i32
    %2 = vector.broadcast %c255_i32 : i32 to vector<1x1x256xi32>
    %3 = arith.cmpi ne, %1, %2 : vector<1x1x256xi32>
    %c0_i32 = arith.constant 0 : i32
    %4 = vector.broadcast %c0_i32 : i32 to vector<1x1x256xi32>
    %5 = arith.select %3, %1, %4 : vector<1x1x256xi1>, vector<1x1x256xi32>
    %cst = arith.constant dense<0xFF800000> : vector<1x256xf32>
    %6 = vector.multi_reduction <maximumf>, %0, %cst [1] : vector<1x4x256xf32> to vector<1x256xf32>
    %7 = vector.shape_cast %6 : vector<1x256xf32> to vector<1x1x256xf32>
    %8 = vector.broadcast %7 : vector<1x1x256xf32> to vector<1x4x256xf32>
    %9 = arith.subf %0, %8 : vector<1x4x256xf32>
    %10 = math.exp %9 : vector<1x4x256xf32>
    %cst_5 = arith.constant dense<0.000000e+00> : vector<1x256xf32>
    %11 = vector.multi_reduction <add>, %10, %cst_5 [1] : vector<1x4x256xf32> to vector<1x256xf32>
    %12 = vector.shape_cast %11 : vector<1x256xf32> to vector<1x1x256xf32>
    %13 = math.log %12 : vector<1x1x256xf32>
    %14 = tpu.iota {dimensions = array<i32: 1>} : vector<1x4x256xi32>
    %15 = vector.broadcast %5 : vector<1x1x256xi32> to vector<1x4x256xi32>
    %16 = arith.cmpi eq, %14, %15 : vector<1x4x256xi32>
    %cst_6 = arith.constant 0.000000e+00 : f32
    %17 = vector.broadcast %cst_6 : f32 to vector<1x4x256xf32>
    %18 = arith.select %16, %9, %17 : vector<1x4x256xi1>, vector<1x4x256xf32>
    %cst_7 = arith.constant dense<0.000000e+00> : vector<1x256xf32>
    %19 = vector.multi_reduction <add>, %18, %cst_7 [1] : vector<1x4x256xf32> to vector<1x256xf32>
    %20 = vector.shape_cast %19 : vector<1x256xf32> to vector<1x1x256xf32>
    %21 = arith.subf %13, %20 : vector<1x1x256xf32>
    %cst_8 = arith.constant 0.000000e+00 : f32
    %22 = vector.broadcast %cst_8 : f32 to vector<1x1x256xf32>
    %23 = arith.subf %22, %21 : vector<1x1x256xf32>
    %24 = math.exp %23 : vector<1x1x256xf32>
    %cst_9 = arith.constant 1.000000e+00 : f32
    %25 = vector.broadcast %cst_9 : f32 to vector<1x1x256xf32>
    %26 = arith.select %3, %24, %25 : vector<1x1x256xi1>, vector<1x1x256xf32>
    %c0_10 = arith.constant 0 : index
    %c0_11 = arith.constant 0 : index
    %c0_12 = arith.constant 0 : index
    %27 = vector.load %arg4[%c0_10, %c0_11, %c0_12] : memref<1x3x256xf32, #tpu.memory_space<vmem>>, vector<1x1x256xf32>
    tpu.vector_store %arg4[%c0_10, %c0_11, %c0_12], %26 {strides = array<i32>} : memref<1x3x256xf32, #tpu.memory_space<vmem>>, vector<1x1x256xf32>,
    %c0_13 = arith.constant 0 : index
    %c1 = arith.constant 1 : index
    %c0_14 = arith.constant 0 : index
    %28 = vector.load %arg4[%c0_13, %c1, %c0_14] : memref<1x3x256xf32, #tpu.memory_space<vmem>>, vector<1x1x256xf32>
    tpu.vector_store %arg4[%c0_13, %c1, %c0_14], %21 {strides = array<i32>} : memref<1x3x256xf32, #tpu.memory_space<vmem>>, vector<1x1x256xf32>,
    %29 = arith.extui %3 : vector<1x1x256xi1> to vector<1x1x256xi32>
    %30 = arith.sitofp %29 : vector<1x1x256xi32> to vector<1x1x256xf32>
    %c0_15 = arith.constant 0 : index
    %c2 = arith.constant 2 : index
    %c0_16 = arith.constant 0 : index
    %31 = vector.load %arg4[%c0_15, %c2, %c0_16] : memref<1x3x256xf32, #tpu.memory_space<vmem>>, vector<1x1x256xf32>
    tpu.vector_store %arg4[%c0_15, %c2, %c0_16], %30 {strides = array<i32>} : memref<1x3x256xf32, #tpu.memory_space<vmem>>, vector<1x1x256xf32>,
    return
  }
  func.func @transform_0(%arg0: i32, %arg1: i32) -> (i32, i32, i32) {
    %c0_i32 = arith.constant 0 : i32
    %c0_i32_0 = arith.constant 0 : i32
    return %arg0, %c0_i32, %arg1 : i32, i32, i32
  }
  func.func @transform_1(%arg0: i32, %arg1: i32) -> (i32, i32, i32) {
    %c0_i32 = arith.constant 0 : i32
    %c0_i32_0 = arith.constant 0 : i32
    return %arg0, %c0_i32, %arg1 : i32, i32, i32
  }
  func.func @transform_2(%arg0: i32, %arg1: i32) -> (i32, i32, i32) {
    %c0_i32 = arith.constant 0 : i32
    %c0_i32_0 = arith.constant 0 : i32
    return %arg0, %c0_i32, %arg1 : i32, i32, i32
  }
}

</mosaic_0001>

<bundles_post_ra>
// kernel: prob_ohem_cross_entropy_2d.1
= control target key start
LH: loop header
LB: loop body
LE: loop exit
PB: predicated region body
PF: predicated region fallthrough
CT: control target
= control target key end

     0   :  { %s550_s9 = smov 0   ;;  %s552_s10 = smov 0   ;;  %s617_s0 = inlined_call_operand.vmem [shape: f32[2,4,256], index: 0, kind: input, shape index: {}]   ;;  %s618_s1 = inlined_call_operand.vmem [shape: s32[2,1,256], index: 1, kind: input, shape index: {}]   ;;  %s619_s2 = inlined_call_operand.vmem [shape: f32[2,3,256], index: 2, kind: output, shape index: {}]  }
   0x1   :  { %s554_s11 = smov 0  }
   0x2 LB: > { %s24_s12 = sadd.s32 1, %s527_s10  ;;  %p459_p0 = scmp.ge.s32.totalorder %s531_s11, 1  ;;  %s531_s11 = sphi %s554_s11, %s12_s11   ;;  %s527_s10 = sphi %s552_s10, %s623_s10   ;;  %s523_s9 = sphi %s550_s9, %s622_s9  }
   0x3   : > { %p26_p1 = scmp.ge.s32.totalorder %s24_s12, 2  ;;  %p149_p2 = scmp.lt.s32.totalorder %s531_s11, 3 }
   0x5   : > { %s625_s12 = smov (%p26_p1, %s24_s12), 0  ;;  %p150_p3 = pnand %p459_p0, %p149_p2 }
   0x6   : > { %p188_p4 = scmp.lt.s32.totalorder (!%p150_p3), %s523_s9, 1  ;;  %vm223_vm0 = vcmask (!%p150_p3), 1043456   ;;  %v266_v0 = vlaneseq (!%p150_p3)  ;;  %v533_v7 = vmov (!%p150_p3), 0.0   ;;  %v534_v61 = vmov (!%p150_p3), 1966171168  }
   0x7   : > { %153 = sbr.rel (%p150_p3) target bundleno = 103 (0x67), region = 28  ;;  %v309_v62 = vunpack.c.l.s4 (!%p150_p3), %v534_v61 }
   0x8   : > { %vm581_vm1 = vcmp.lt.s32.totalorder (!%p150_p3), %v266_v0, 256  ;;  %v267_v21 = vshrl.u32 (!%p150_p3), %v266_v0, 7 }
   0xa   : > { %v270_v24 = vsub.s32 (!%p150_p3), 0, %v267_v21  ;;  %v274_v27 = vsub.s32 (!%p150_p3), 1, %v267_v21 }
   0xe   : > { %s627_s9 = smov (!%p188_p4, %s523_s9), 1 }
   0xf   : > { %s470_s13 = sshll.u32 %s627_s9, 3  ;;  %s462_s14 = sshll.u32 %s627_s9, 1 }
  0x10   : > { %s195_s17 = scalar_lea.vmem %s617_s0, %s470_s13  ;;  %s204_s20 = scalar_lea.vmem %s618_s1, %s462_s14 }
  0x11   : > { %s577_s23 = scalar_lea.vmem %s619_s2, %s470_s13  ;;  %v216_v1 = vld [vmem:[%s195_s17] sm:$0xff] }
  0x12   : > { %v579_v2 = vld [vmem:[%s204_s20] sm:$0x3]  ;;  %v221_v4 = vcombine.high %v216_v1, %v216_v1  ;;  %v224_v5 = vsel %vm223_vm0, %v216_v1, -inf }
  0x13   : > { %vm218_vm2 = vcmp.ne.s32.totalorder %v579_v2, 255  ;;  %v225_v6 = vrot.slane %v224_v5, 4 }
  0x14   : > { %v466_v8 = vsel %vm218_vm2, 1.0, %v533_v7  ;;  %v231_v9 = vsel %vm223_vm0, %v221_v4, -inf  ;;  %v219_v25 = vsel %vm218_vm2, %v579_v2, 0 }
  0x15   : > { %467 = vst.msk [vmem:[%s577_s23 + $0x2] ss:$4 sm:$0x3] %vm581_vm1, %v466_v8  ;;  %v226_v10 = vmax.f32 %v224_v5, %v225_v6  ;;  %v232_v11 = vrot.slane %v231_v9, 4  ;;  %v271_v28 = vrot.slane %v219_v25, %v270_v24  ;;  %v275_v29 = vrot.slane %v219_v25, %v274_v27 }
  0x16   : > { %v310_v5 = vunpack.c.0.s8 %v309_v62 }
  0x17   : > { %v227_v12 = vrot.slane %v226_v10, 2  ;;  %v233_v13 = vmax.f32 %v231_v9, %v232_v11  ;;  %vm276_vm3 = vcmp.eq.s32.totalorder %v267_v21, %v271_v28  ;;  %vm277_vm4 = vcmp.eq.s32.totalorder %v267_v21, %v275_v29 }
  0x18   : > { %v313_v11 = vsub.s32 %v310_v5, %v267_v21 }
  0x19   : > { %v228_v14 = vmax.f32 %v226_v10, %v227_v12  ;;  %v234_v15 = vrot.slane %v233_v13, 2 }
  0x1b   : > { %v229_v16 = vrot.slane %v228_v14, 1  ;;  %v235_v17 = vmax.f32 %v233_v13, %v234_v15 }
  0x1d   : > { %v230_v18 = vmax.f32 %v228_v14, %v229_v16  ;;  %v236_v19 = vrot.slane %v235_v17, 1 }
  0x1f   : > { %v237_v20 = vmax.f32 %v235_v17, %v236_v19 }
  0x21   : > { %v240_v22 = vcombine.low %v230_v18, %v237_v20 }
  0x23   : > { %v242_v23 = vsub.f32 %v216_v1, %v240_v22 }
  0x25   : > { %v243_v26 = vmul.f32 1.442695, %v242_v23  ;;  %v279_v30 = vcombine.high %v242_v23, %v242_v23  ;;  %v281_v31 = vsel %vm276_vm3, %v242_v23, 0.0 }
  0x26   : > { %v283_v34 = vsel %vm223_vm0, %v281_v31, 0.0 }
  0x27   : > { %499 = vpow2.f32 %v243_v26  ;;  %v282_v32 = vsel %vm277_vm4, %v279_v30, 0.0  ;;  %v284_v40 = vrot.slane %v283_v34, 4 }
  0x28   : > { %v290_v38 = vsel %vm223_vm0, %v282_v32, 0.0 }
  0x29   : > { %v291_v43 = vrot.slane %v290_v38, 4  ;;  %v285_v46 = vadd.f32 %v284_v40, %v283_v34 }
  0x2b   : > { %v292_v49 = vadd.f32 %v291_v43, %v290_v38  ;;  %v286_v52 = vrot.slane %v285_v46, 2 }
  0x2d   : > { %v293_v55 = vrot.slane %v292_v49, 2  ;;  %v287_v57 = vadd.f32 %v286_v52, %v285_v46 }
  0x2f   : > { %v294_v58 = vadd.f32 %v293_v55, %v292_v49  ;;  %v288_v59 = vrot.slane %v287_v57, 1 }
  0x31   : > { %v500_v33 = vpop.eup %499  ;;  %v295_v60 = vrot.slane %v294_v58, 1  ;;  %v289_v63 = vadd.f32 %v288_v59, %v287_v57 }
  0x32   : > { %v246_v35 = vcombine.high %v500_v33, %v500_v33  ;;  %v248_v36 = vsel %vm223_vm0, %v500_v33, 0.0 }
  0x33   : > { %v249_v37 = vrot.slane %v248_v36, 4  ;;  %v296_v4 = vadd.f32 %v295_v60, %v294_v58 }
  0x34   : > { %v255_v39 = vsel %vm223_vm0, %v246_v35, 0.0 }
  0x35   : > { %v250_v41 = vadd.f32 %v249_v37, %v248_v36  ;;  %v256_v42 = vrot.slane %v255_v39, 4 }
  0x37   : > { %v251_v44 = vrot.slane %v250_v41, 2  ;;  %v257_v45 = vadd.f32 %v256_v42, %v255_v39 }
  0x39   : > { %v252_v47 = vadd.f32 %v251_v44, %v250_v41  ;;  %v258_v48 = vrot.slane %v257_v45, 2 }
  0x3b   : > { %v253_v50 = vrot.slane %v252_v47, 1  ;;  %v259_v51 = vadd.f32 %v258_v48, %v257_v45 }
  0x3d   : > { %v254_v53 = vadd.f32 %v253_v50, %v252_v47  ;;  %v260_v54 = vrot.slane %v259_v51, 1 }
  0x3f   : > { %v261_v56 = vadd.f32 %v260_v54, %v259_v51  ;;  %501 = vlog2.f32 %v254_v53 }
  0x41   : > { %503 = vlog2.f32 %v261_v56 }
  0x49   : > { %v502_v0 = vpop.eup %501 }
  0x4a   : > { %v263_v1 = vmul.f32 0.6931472, %v502_v0 }
  0x4b   : > { %v504_v6 = vpop.eup %503 }
  0x4c   : > { %v265_v7 = vmul.f32 0.6931472, %v504_v6  ;;  %v297_v8 = vsub.f32 %v263_v1, %v289_v63 }
  0x4e   : > { %v298_v9 = vsub.f32 %v265_v7, %v296_v4  ;;  %v299_v10 = vsub.f32 0.0, %v297_v8 }
  0x50   : > { %v300_v12 = vsub.f32 0.0, %v298_v9  ;;  %v301_v13 = vmul.f32 1.442695, %v299_v10  ;;  %v331_v14 = vcombine.low %v297_v8, %v298_v9 }
  0x52   : > { %505 = vpow2.f32 %v301_v13  ;;  %v303_v15 = vmul.f32 1.442695, %v300_v12  ;;  %v338_v16 = vrot.slane %v331_v14, %v313_v11 }
  0x54   : > { %507 = vpow2.f32 %v303_v15  ;;  %v345_v17 = vrot.slane %v338_v16, %v313_v11 }
  0x56   : > { %465 = vst.msk [vmem:[%s577_s23 + $0x1] ss:$4 sm:$0x3] %vm581_vm1, %v345_v17 }
  0x5c   : > { %v506_v18 = vpop.eup %505 }
  0x5e   : > { %v508_v19 = vpop.eup %507 }
  0x5f   : > { %v307_v20 = vcombine.low %v506_v18, %v508_v19 }
  0x61   : > { %v314_v22 = vrot.slane %v307_v20, %v313_v11 }
  0x63   : > { %v321_v23 = vrot.slane %v314_v22, %v313_v11 }
  0x65   : > { %v323_v21 = vsel %vm218_vm2, %v321_v23, 1.0 }
  0x66   : > { %328 = vst.msk [vmem:[%s577_s23] ss:$4 sm:$0x3] %vm581_vm1, %v323_v21 }
  0x67 PF: > { %s12_s11 = sadd.s32 1, %s531_s11   ;;  %s622_s9 = smov %s527_s10 }
  0x68   : > { %p9_p5 = scmp.ge.s32.totalorder %s12_s11, 4   ;;  %s623_s10 = smov %s625_s12 }
  0x6a   :  { %11 = sbr.rel (!%p9_p5) target bundleno = 2 (0x2), region = 63 }

</bundles_post_ra>
